<compile_context>
chip_gen: v7x
topology: tpu7x:2x2x1
jax: 0.10.0
libtpu: 0.0.40
codegen_flags: <defaults>
</compile_context>

<pallas_src>
import functools

import jax
import jax.numpy as jnp
from jax.experimental import pallas as pl
from jax.experimental.pallas import tpu as pltpu


# ----------------------------- kernels ------------------------------------ #

def _stats_kernel(x_ref, sum_ref, sumsq_ref, psum_ref, psumsq_ref):
    """Per-row sum / sum-of-squares, accumulated across column tiles.

    Hot loop is pure VALU: 128-lane groups of the tile are added into
    lane-dense (tile_r, 128) scratch slabs.  The cross-lane (XLU) reduce and
    the masked 1-lane output store happen only on the last column step.
    """
    j = pl.program_id(1)
    nj = pl.num_programs(1)

    @pl.when(j == 0)
    def _():
        psum_ref[...] = jnp.zeros_like(psum_ref)
        psumsq_ref[...] = jnp.zeros_like(psumsq_ref)

    x = x_ref[...].astype(jnp.float32)
    tw = x.shape[1]                         # static; always a multiple of 128
    acc_s = x[:, 0:128]
    acc_q = acc_s * acc_s
    for g in range(1, tw // 128):           # static lane-group slices: free views
        xs = x[:, g * 128:(g + 1) * 128]
        acc_s = acc_s + xs
        acc_q = acc_q + xs * xs
    psum_ref[...] += acc_s
    psumsq_ref[...] += acc_q

    @pl.when(j == nj - 1)
    def _():
        sum_ref[...] = jnp.sum(psum_ref[...], axis=1, keepdims=True)
        sumsq_ref[...] = jnp.sum(psumsq_ref[...], axis=1, keepdims=True)


def _norm_lrelu_kernel(x_ref, scale_ref, shift_ref, o_ref, *, negative_slope):
    """Fused affine-normalize + LeakyReLU over a (rows, lanes) tile."""
    x = x_ref[...].astype(jnp.float32)
    y = x * scale_ref[...] + shift_ref[...]          # (tile_r,1) lane-broadcast
    o_ref[...] = jnp.where(y >= 0, y, negative_slope * y).astype(o_ref.dtype)


# ----------------------------- tiling helpers ------------------------------ #

def _round_up(x, m):
    return ((x + m - 1) // m) * m


def _pick_tile(dim, unit, target):
    """Largest multiple of `unit` that divides `dim` and is <= target.

    Callers pad `dim` to a multiple of `unit`, so a divisor (at least `unit`)
    always exists and the tile never exceeds `target` (no VMEM blow-up).
    """
    if dim <= target:
        return dim
    top = (min(dim, target) // unit) * unit
    for cand in range(top, unit - 1, -unit):
        if dim % cand == 0:
            return cand
    return unit


# ----------------------------- wrapper ------------------------------------ #

def inplace_abn_sync(x_nchw, gamma, beta, *, eps=1e-5, negative_slope=0.01,
                     target_block_bytes=4 * 1024 * 1024, donate_x=False):
    N, C, H, W = x_nchw.shape
    in_dtype = x_nchw.dtype
    itemsize = jnp.dtype(in_dtype).itemsize
    work_itemsize = max(itemsize, 4)       # size tiles on the f32 working set

    R = N * C
    HW = H * W

    # Free view: contiguous NCHW -> (N*C, H*W).  (Folding W instead, i.e.
    # (N*C*H, W), never improves lane density: W % 128 == 0 implies HW % 128 == 0.)
    x2d = x_nchw.reshape(R, HW)

    # Lane-dense layout: zero-pad lanes to a multiple of 128 and rows to a
    # multiple of 8 when necessary (zeros are neutral for the statistics).
    L_pad = _round_up(HW, 128)
    R_pad = _round_up(R, 8)
    if L_pad != HW or R_pad != R:
        x2d = jnp.pad(x2d, ((0, R_pad - R), (0, L_pad - HW)))

    # Column (lane) tile: multiple of 128 dividing L_pad.
    tile_w = _pick_tile(L_pad, 128, max(128, min(L_pad, 4096)))
    # Row tile: fill ~target_block_bytes of f32 working set; keep >= 2 row
    # blocks when possible so pass 1's "parallel" axis can shard across both
    # TensorCores on v7x megacore.
    target_r = max(8, target_block_bytes // max(1, tile_w * work_itemsize))
    if R_pad >= 16:
        target_r = max(8, min(target_r, R_pad // 2))
    tile_r = _pick_tile(R_pad, 8, target_r)

    n_r = R_pad // tile_r
    n_w = L_pad // tile_w

    block_bytes = tile_r * tile_w * work_itemsize
    # Leave headroom under physical VMEM (64 MiB/core on v7x): cap at 48 MiB;
    # a 32 MiB floor still covers the double-buffered blocks everywhere.
    vmem_limit = int(min(48 * 2 ** 20, max(32 * 2 ** 20, 8 * block_bytes)))

    elems = R_pad * L_pad

    # ---- Pass 1: per-row (sum, sum of squares).  Row axis parallel; column
    # axis accumulates in lane-dense VMEM scratch, outputs written on the
    # last column step only.
    s_rows, ss_rows = pl.pallas_call(
        _stats_kernel,
        out_shape=(jax.ShapeDtypeStruct((R_pad, 1), jnp.float32),
                   jax.ShapeDtypeStruct((R_pad, 1), jnp.float32)),
        grid_spec=pltpu.PrefetchScalarGridSpec(
            num_scalar_prefetch=0,
            grid=(n_r, n_w),
            in_specs=[pl.BlockSpec((tile_r, tile_w), lambda i, j: (i, j))],
            out_specs=(pl.BlockSpec((tile_r, 1), lambda i, j: (i, 0)),
                       pl.BlockSpec((tile_r, 1), lambda i, j: (i, 0))),
            scratch_shapes=[pltpu.VMEM((tile_r, 128), jnp.float32),
                            pltpu.VMEM((tile_r, 128), jnp.float32)]),
        compiler_params=pltpu.CompilerParams(
            dimension_semantics=("parallel", "arbitrary"),
            vmem_limit_bytes=vmem_limit),
        cost_estimate=pl.CostEstimate(
            flops=3 * elems, transcendentals=0,
            bytes_accessed=elems * itemsize + 8 * R_pad),
    )(x2d)

    # ---- Tiny glue on (N*C,) / (C,) arrays: combine over batch, fold into
    # per-row scale & shift.
    count = jnp.float32(N * HW)
    ch_sum = jnp.sum(s_rows[:R, 0].reshape(N, C), axis=0)
    ch_sumsq = jnp.sum(ss_rows[:R, 0].reshape(N, C), axis=0)
    mean = ch_sum / count
    # TODO(synk): E[x^2]-E[x]^2 in f32 can cancel catastrophically for huge
    # N*H*W with |mean| >> std; a compensated/Welford merge would be sturdier.
    var = jnp.maximum(ch_sumsq / count - mean * mean, 0.0)   # biased; clamp >=0
    inv_std = jax.lax.rsqrt(var + eps)
    scale = gamma.astype(jnp.float32) * inv_std
    shift = beta.astype(jnp.float32) - mean * scale
    scale_rows = jnp.tile(scale, N).reshape(R, 1)            # row r -> channel r%C
    shift_rows = jnp.tile(shift, N).reshape(R, 1)
    if R_pad != R:
        scale_rows = jnp.pad(scale_rows, ((0, R_pad - R), (0, 0)))
        shift_rows = jnp.pad(shift_rows, ((0, R_pad - R), (0, 0)))

    # ---- Pass 2: fused normalize + LeakyReLU, streamed in lane-dense tiles.
    # Column axis innermost keeps the (tile_r,1) scale/shift blocks resident.
    extra = {}
    if donate_x:
        # Matches InPlaceABN's in-place update; only a win if the caller
        # actually donates x (otherwise XLA inserts a defensive copy).
        extra["input_output_aliases"] = {0: 0}
    y2d = pl.pallas_call(
        functools.partial(_norm_lrelu_kernel, negative_slope=negative_slope),
        out_shape=jax.ShapeDtypeStruct((R_pad, L_pad), in_dtype),
        grid_spec=pltpu.PrefetchScalarGridSpec(
            num_scalar_prefetch=0,
            grid=(n_r, n_w),
            in_specs=[pl.BlockSpec((tile_r, tile_w), lambda i, j: (i, j)),
                      pl.BlockSpec((tile_r, 1), lambda i, j: (i, 0)),
                      pl.BlockSpec((tile_r, 1), lambda i, j: (i, 0))],
            out_specs=pl.BlockSpec((tile_r, tile_w), lambda i, j: (i, j))),
        compiler_params=pltpu.CompilerParams(
            dimension_semantics=("parallel", "parallel"),
            vmem_limit_bytes=vmem_limit),
        cost_estimate=pl.CostEstimate(
            flops=4 * elems, transcendentals=0,
            bytes_accessed=2 * elems * itemsize + 8 * R_pad),
        **extra,
    )(x2d, scale_rows, shift_rows)

    if R_pad != R or L_pad != HW:
        y2d = y2d[:R, :HW]
    return y2d.reshape(N, C, H, W)


# ----------------------------- demo / check -------------------------------- #

def _reference(x_nchw, gamma, beta, eps=1e-5, negative_slope=0.01):
    mean = jnp.mean(x_nchw, axis=(0, 2, 3), keepdims=True)
    var = jnp.var(x_nchw, axis=(0, 2, 3), keepdims=True)  # biased
    y = (x_nchw - mean) / jnp.sqrt(var + eps)
    y = y * gamma.reshape(1, -1, 1, 1) + beta.reshape(1, -1, 1, 1)
    return jnp.where(y >= 0, y, negative_slope * y)


if __name__ == "__main__":
    key = jax.random.PRNGKey(0)
    kx, kg, kb = jax.random.split(key, 3)

    N, C, H, W = 2, 4, 16, 16
    x = jax.random.normal(kx, (N, C, H, W), dtype=jnp.float32) * 2.0 + 0.5
    # BatchNorm2d affine params of shape (C,).
    gamma = 1.0 + 0.1 * jax.random.normal(kg, (C,), dtype=jnp.float32)
    beta = 0.1 * jax.random.normal(kb, (C,), dtype=jnp.float32)

    out = inplace_abn_sync(x, gamma, beta)
    out = jax.block_until_ready(out)

    ref = _reference(x, gamma, beta)
    assert out.shape == (N, C, H, W)
    err = float(jnp.max(jnp.abs(out - ref)))
    assert jnp.allclose(out, ref, atol=1e-4, rtol=1e-4), err

    print("KERNEL_OK")
</pallas_src>

<mosaic_0001>
module attributes {stable_mosaic.version = 11 : i64} {
  func.func @_stats_kernel(%arg0: i32, %arg1: i32, %arg2: memref<8x256xf32, #tpu.memory_space<vmem>>, %arg3: memref<8x1xf32, #tpu.memory_space<vmem>>, %arg4: memref<8x1xf32, #tpu.memory_space<vmem>>, %arg5: memref<8x128xf32, #tpu.memory_space<vmem>>, %arg6: memref<8x128xf32, #tpu.memory_space<vmem>>) attributes {dimension_semantics = [#tpu.dimension_semantics<parallel>, #tpu.dimension_semantics<arbitrary>], iteration_bounds = array<i64: 1, 1>, scalar_prefetch = 0 : i64, scratch_operands = 2 : i64, tpu.core_type = #tpu.core_type<tc>, window_params = [{transform_indices = @transform_0, window_bounds = array<i64: 8, 256>}, {transform_indices = @transform_1, window_bounds = array<i64: 8, 1>}, {transform_indices = @transform_2, window_bounds = array<i64: 8, 1>}]} {
    %c0_i32 = arith.constant 0 : i32
    %0 = arith.cmpi eq, %arg1, %c0_i32 : i32
    %1 = arith.extui %0 : i1 to i32
    %c0_i32_0 = arith.constant 0 : i32
    %2 = arith.cmpi ne, %1, %c0_i32_0 : i32
    scf.if %2 {
      %cst = arith.constant 0.000000e+00 : f32
      %19 = vector.broadcast %cst : f32 to vector<8x128xf32>
      %c0_12 = arith.constant 0 : index
      %c0_13 = arith.constant 0 : index
      %20 = vector.load %arg5[%c0_12, %c0_13] : memref<8x128xf32, #tpu.memory_space<vmem>>, vector<8x128xf32>
      tpu.vector_store %arg5[%c0_12, %c0_13], %19 {strides = array<i32>} : memref<8x128xf32, #tpu.memory_space<vmem>>, vector<8x128xf32>,
      %cst_14 = arith.constant 0.000000e+00 : f32
      %21 = vector.broadcast %cst_14 : f32 to vector<8x128xf32>
      %c0_15 = arith.constant 0 : index
      %c0_16 = arith.constant 0 : index
      %22 = vector.load %arg6[%c0_15, %c0_16] : memref<8x128xf32, #tpu.memory_space<vmem>>, vector<8x128xf32>
      tpu.vector_store %arg6[%c0_15, %c0_16], %21 {strides = array<i32>} : memref<8x128xf32, #tpu.memory_space<vmem>>, vector<8x128xf32>,
    } else {
    }
    %c0 = arith.constant 0 : index
    %c0_1 = arith.constant 0 : index
    %3 = vector.load %arg2[%c0, %c0_1] : memref<8x256xf32, #tpu.memory_space<vmem>>, vector<8x256xf32>
    %4 = vector.extract_strided_slice %3 {offsets = [0, 0], sizes = [8, 128], strides = [1, 1]} : vector<8x256xf32> to vector<8x128xf32>
    %5 = arith.mulf %4, %4 : vector<8x128xf32>
    %6 = vector.extract_strided_slice %3 {offsets = [0, 128], sizes = [8, 128], strides = [1, 1]} : vector<8x256xf32> to vector<8x128xf32>
    %7 = arith.addf %4, %6 : vector<8x128xf32>
    %8 = arith.mulf %6, %6 : vector<8x128xf32>
    %9 = arith.addf %5, %8 : vector<8x128xf32>
    %c0_2 = arith.constant 0 : index
    %c0_3 = arith.constant 0 : index
    %10 = vector.load %arg5[%c0_2, %c0_3] : memref<8x128xf32, #tpu.memory_space<vmem>>, vector<8x128xf32>
    %11 = arith.addf %10, %7 : vector<8x128xf32>
    %c0_4 = arith.constant 0 : index
    %c0_5 = arith.constant 0 : index
    %12 = vector.load %arg5[%c0_4, %c0_5] : memref<8x128xf32, #tpu.memory_space<vmem>>, vector<8x128xf32>
    tpu.vector_store %arg5[%c0_4, %c0_5], %11 {strides = array<i32>} : memref<8x128xf32, #tpu.memory_space<vmem>>, vector<8x128xf32>,
    %c0_6 = arith.constant 0 : index
    %c0_7 = arith.constant 0 : index
    %13 = vector.load %arg6[%c0_6, %c0_7] : memref<8x128xf32, #tpu.memory_space<vmem>>, vector<8x128xf32>
    %14 = arith.addf %13, %9 : vector<8x128xf32>
    %c0_8 = arith.constant 0 : index
    %c0_9 = arith.constant 0 : index
    %15 = vector.load %arg6[%c0_8, %c0_9] : memref<8x128xf32, #tpu.memory_space<vmem>>, vector<8x128xf32>
    tpu.vector_store %arg6[%c0_8, %c0_9], %14 {strides = array<i32>} : memref<8x128xf32, #tpu.memory_space<vmem>>, vector<8x128xf32>,
    %c0_i32_10 = arith.constant 0 : i32
    %16 = arith.cmpi eq, %arg1, %c0_i32_10 : i32
    %17 = arith.extui %16 : i1 to i32
    %c0_i32_11 = arith.constant 0 : i32
    %18 = arith.cmpi ne, %17, %c0_i32_11 : i32
    scf.if %18 {
      %c0_12 = arith.constant 0 : index
      %c0_13 = arith.constant 0 : index
      %19 = vector.load %arg5[%c0_12, %c0_13] : memref<8x128xf32, #tpu.memory_space<vmem>>, vector<8x128xf32>
      %cst = arith.constant dense<0.000000e+00> : vector<8xf32>
      %20 = vector.multi_reduction <add>, %19, %cst [1] : vector<8x128xf32> to vector<8xf32>
      %21 = vector.shape_cast %20 : vector<8xf32> to vector<8x1xf32>
      %c0_14 = arith.constant 0 : index
      %c0_15 = arith.constant 0 : index
      %22 = vector.load %arg3[%c0_14, %c0_15] : memref<8x1xf32, #tpu.memory_space<vmem>>, vector<8x1xf32>
      tpu.vector_store %arg3[%c0_14, %c0_15], %21 {strides = array<i32>} : memref<8x1xf32, #tpu.memory_space<vmem>>, vector<8x1xf32>,
      %c0_16 = arith.constant 0 : index
      %c0_17 = arith.constant 0 : index
      %23 = vector.load %arg6[%c0_16, %c0_17] : memref<8x128xf32, #tpu.memory_space<vmem>>, vector<8x128xf32>
      %cst_18 = arith.constant dense<0.000000e+00> : vector<8xf32>
      %24 = vector.multi_reduction <add>, %23, %cst_18 [1] : vector<8x128xf32> to vector<8xf32>
      %25 = vector.shape_cast %24 : vector<8xf32> to vector<8x1xf32>
      %c0_19 = arith.constant 0 : index
      %c0_20 = arith.constant 0 : index
      %26 = vector.load %arg4[%c0_19, %c0_20] : memref<8x1xf32, #tpu.memory_space<vmem>>, vector<8x1xf32>
      tpu.vector_store %arg4[%c0_19, %c0_20], %25 {strides = array<i32>} : memref<8x1xf32, #tpu.memory_space<vmem>>, vector<8x1xf32>,
    } else {
    }
    return
  }
  func.func @transform_0(%arg0: i32, %arg1: i32) -> (i32, i32) {
    %c0_i32 = arith.constant 0 : i32
    return %arg0, %arg1 : i32, i32
  }
  func.func @transform_1(%arg0: i32, %arg1: i32) -> (i32, i32) {
    %c0_i32 = arith.constant 0 : i32
    %c0_i32_0 = arith.constant 0 : i32
    return %arg0, %c0_i32 : i32, i32
  }
  func.func @transform_2(%arg0: i32, %arg1: i32) -> (i32, i32) {
    %c0_i32 = arith.constant 0 : i32
    %c0_i32_0 = arith.constant 0 : i32
    return %arg0, %c0_i32 : i32, i32
  }
}

</mosaic_0001>

<bundles_post_ra>
// kernel: tpu_custom_call.1
= control target key start
LH: loop header
LB: loop body
LE: loop exit
PB: predicated region body
PF: predicated region fallthrough
CT: control target
= control target key end

     0   :  { %8 = vsyncpa [#allocation5], 0  ;;  %s86_s9 = smov [#allocation4]   ;;  %s120_s0 = inlined_call_operand.hbm [shape: f32[8,256], index: 0, kind: input, shape index: {}]   ;;  %s121_s1 = inlined_call_operand.vmem [shape: f32[8,1], index: 1, kind: output, shape index: {0}]   ;;  %s122_s2 = inlined_call_operand.vmem [shape: f32[8,1], index: 2, kind: output, shape index: {1}]  }
   0x1   :  { %s15_s10 = sshll.u32 %s86_s9, 4  ;;  %s62_s13 = scalar_lea.hbm %s120_s0, 256  ;;  %s16_s10 = int_to_ptr.vmem [resolvable:$true] %s15_s10 }
   0x2   :  { %p63_p0 = scmp.ne.s32.totalorder %s120_s0, %s62_s13  ;;  %p66_p1 = scmp.lt.u32.totalorder %s62_s13, %s120_s0 }
   0x4   :  { %p68_p2 = pnand %p66_p1, %p63_p0 }
   0x6   :  { %71 = shalt.err (!%p68_p2)
}
   0x7   :  { %s72_s18 = scalar_lea.vmem %s16_s10, 256  ;;  %p77_p4 = scmp.lt.s32.totalorder %s16_s10, %s16_s10 }
   0x8   :  { %p73_p3 = scmp.ne.s32.totalorder %s16_s10, %s72_s18  ;;  %p78_p5 = scmp.lt.s32.totalorder %s72_s18, %s72_s18 }
   0xa   :  { %p79_p6 = por %p78_p5, %p77_p4 }
   0xc   :  { %p80_p7 = pnand %p79_p6, %p73_p3 }
   0xe   :  { %83 = shalt.err (!%p80_p7)
}
   0xf   :  { %18 = dma.hbm_to_vmem [thread:$0]  %s120_s0, 256, %s16_s10, [#allocation5]  }
  0x10   :  { %84 = dma.done.wait [#allocation5], 256  }
  0x11   :  { %85 = vsyncadd [#allocation5], 4294967040  ;;  %v28_v0 = vld [vmem:[#allocation4] sm:$0xff]  ;;  %v29_v1 = vld [vmem:[#allocation4 + $0x8] sm:$0xff]  ;;  %vm46_vm0 = vcmask 7168  }
  0x12   :  { %v31_v2 = vadd.f32 %v29_v1, %v28_v0  ;;  %v32_v3 = vmul.f32 %v29_v1, %v29_v1  ;;  %v30_v4 = vmul.f32 %v28_v0, %v28_v0 }
  0x14   :  { %44 = vadd.xlane.f32.xlu0 %v31_v2  ;;  %v33_v5 = vadd.f32 %v32_v3, %v30_v4 }
  0x18   :  { %49 = vadd.xlane.f32.xlu0 %v33_v5 }
  0xa1   :  { %v45_v6 = vpop.xlane.xlu0 %44 }
  0xa2   :  { %47 = vst.msk [vmem:[%s121_s1] sm:$0xff] %vm46_vm0, %v45_v6 }
  0xa5   :  { %v50_v7 = vpop.xlane.xlu0 %49 }
  0xa6   :  { %51 = vst.msk [vmem:[%s122_s2] sm:$0xff] %vm46_vm0, %v50_v7 }
  0xa7   :  { %60 = vsyncpa [#allocation5], 1 }

</bundles_post_ra>
